<compile_context>
chip_gen: v5e
topology: v5e:2x2
jax: 0.10.0
libtpu: 0.0.40
codegen_flags: <defaults>
</compile_context>

<pallas_src>
import math

import jax
import jax.numpy as jnp
from jax.experimental import pallas as pl
from jax.experimental.pallas import tpu as pltpu


# -----------------------------------------------------------------------------
# Kernels
# -----------------------------------------------------------------------------
def _alias_noop_kernel(x_hbm_ref, o_hbm_ref):
    # Output buffer IS the input buffer (input_output_aliases={0: 0}); the data
    # is already correct, so just pin an ordering dep on the aliased output.
    del x_hbm_ref
    pltpu.touch(o_hbm_ref)


def _copy_kernel(x_ref, o_ref):
    # Pure lane-dense tile copy: identical in/out blocks, full-vreg vld/vst,
    # zero cross-lane/sublane relayout.
    o_ref[...] = x_ref[...]


# -----------------------------------------------------------------------------
# Generation-aware tiling helpers
# -----------------------------------------------------------------------------
def _vmem_budgets():
    """(per-tile byte budget, scoped vmem_limit_bytes, physical VMEM bytes)."""
    try:
        vmem_cap = int(pltpu.get_tpu_info().vmem_capacity_bytes)
    except Exception:
        vmem_cap = 64 * 1024 * 1024  # unknown: assume v7x (most constrained)
    if vmem_cap >= 128 * 1024 * 1024:  # v5e / v6e: 128 MiB physical VMEM
        return 8 * 1024 * 1024, 96 * 1024 * 1024, vmem_cap
    return 4 * 1024 * 1024, 32 * 1024 * 1024, vmem_cap  # v7x: 64 MiB


def _lane_dense_slab(n, flat):
    """Re-cut the contiguous n*flat buffer into (rows, cols) with cols a
    multiple of 128 (unmasked vst) whenever that is possible without padding."""
    total = n * flat
    if flat % 128 == 0 or total % 128 != 0:
        # Already lane dense, or cannot re-cut without padding (rare/odd case:
        # full-extent last-dim block keeps it legal, just with masked tail).
        return n, flat
    for cols in (16384, 8192, 4096, 2048, 1024, 512, 256, 128):
        if total % cols == 0:
            return total // cols, cols
    return n, flat  # unreachable (128 divides total); kept for safety


def _tiles(rows, cols, itemsize, tile_budget):
    """Byte-budgeted (tb, tf) block shape obeying the (8, 128) rule on both
    axes (both branches enforce the budget — fixes the wide-row / single-block
    VMEM hazard from the review)."""
    if cols % 128 == 0:
        tf = min(cols, max(128, ((tile_budget // (8 * itemsize)) // 128) * 128))
    else:
        tf = cols  # full-extent last-dim block is always legal
    tb = max(1, tile_budget // max(1, tf * itemsize))
    tb = max(8, (tb // 8) * 8)
    if rows <= tb or rows < 8:
        tb = rows  # full-extent block is always legal (covers tiny N)
    return tb, tf


# -----------------------------------------------------------------------------
# Paths
# -----------------------------------------------------------------------------
def _flatten_alias(x2, n, flat):
    """Zero-copy path: output aliases the (already flat) input buffer."""
    return pl.pallas_call(
        _alias_noop_kernel,
        out_shape=jax.ShapeDtypeStruct((n, flat), x2.dtype),
        in_specs=[pl.BlockSpec(memory_space=pl.ANY)],
        out_specs=pl.BlockSpec(memory_space=pl.ANY),
        input_output_aliases={0: 0},
    )(x2)


def _flatten_copy(x2, n, flat):
    """Explicit lane-dense, byte-budgeted tiled HBM copy."""
    itemsize = jnp.dtype(x2.dtype).itemsize
    total = n * flat
    tile_budget, vmem_limit, vmem_cap = _vmem_budgets()

    rows, cols = _lane_dense_slab(n, flat)
    slab = x2.reshape(rows, cols)  # metadata-only on contiguous data
    tb, tf = _tiles(rows, cols, itemsize, tile_budget)
    # 2 in + 2 out double-buffered tiles must fit under the scoped limit.
    vmem_limit = max(vmem_limit, min(4 * tb * tf * itemsize + (1 << 20), vmem_cap))

    grid = (pl.cdiv(rows, tb), pl.cdiv(cols, tf))
    out = pl.pallas_call(
        _copy_kernel,
        out_shape=jax.ShapeDtypeStruct((rows, cols), x2.dtype),
        grid=grid,
        in_specs=[pl.BlockSpec((tb, tf), lambda i, j: (i, j))],
        out_specs=pl.BlockSpec((tb, tf), lambda i, j: (i, j)),
        compiler_params=pltpu.CompilerParams(
            dimension_semantics=("parallel", "parallel"),
            vmem_limit_bytes=int(vmem_limit),
        ),
        cost_estimate=pl.CostEstimate(
            flops=0, transcendentals=0, bytes_accessed=2 * total * itemsize),
    )(slab)
    return out.reshape(n, flat)


def flatten_pallas(x, donate=True):
    """Pallas equivalent of feat.view(feat.size(0), -1) (PyTorch Flatten).

    donate=True : output aliases the input buffer (no HBM copy) — same
                  storage-sharing semantics as torch .view.
    donate=False: explicit lane-dense tiled copy (use when aliasing/donation
                  semantics are not acceptable for the caller).
    """
    n = x.shape[0]
    flat = int(math.prod(x.shape[1:])) if x.ndim > 1 else 1
    # Metadata-only row-major flatten in the wrapper (matches torch .view
    # (C, H, W) ordering for contiguous NCHW input).
    x2 = x.reshape(n, flat)

    if donate:
        try:
            return _flatten_alias(x2, n, flat)
        except Exception:
            # Aliased no-op path unavailable in this context: fall back to the
            # explicit copy so the op still works everywhere.
            pass
    return _flatten_copy(x2, n, flat)


if __name__ == "__main__":
    key = jax.random.PRNGKey(0)
    x = jax.random.normal(key, (2, 4, 16, 16), dtype=jnp.float32)
    ref = x.reshape(x.shape[0], -1)  # same semantics as torch .view(N, -1)

    # Zero-copy aliased path (default).
    out_alias = flatten_pallas(x, donate=True)
    jax.block_until_ready(out_alias)
    assert out_alias.shape == (2, 4 * 16 * 16), out_alias.shape
    assert bool(jnp.array_equal(out_alias, ref)), "alias path mismatch"

    # Explicit lane-dense tiled copy path.
    out_copy = flatten_pallas(x, donate=False)
    jax.block_until_ready(out_copy)
    assert out_copy.shape == (2, 4 * 16 * 16), out_copy.shape
    assert bool(jnp.array_equal(out_copy, ref)), "copy path mismatch"

    print("KERNEL_OK")
</pallas_src>

<mosaic_0001>
module attributes {stable_mosaic.version = 11 : i64} {
  func.func @_alias_noop_kernel(%arg0: memref<2x1024xf32, #tpu.memory_space<any>>, %arg1: memref<2x1024xf32, #tpu.memory_space<any>>) attributes {dimension_semantics = [], scalar_prefetch = 0 : i64, scratch_operands = 0 : i64, tpu.core_type = #tpu.core_type<tc>} {
    return
  }
}

module attributes {stable_mosaic.version = 11 : i64} {
  func.func @_copy_kernel(%arg0: i32, %arg1: i32, %arg2: memref<2x1024xf32, #tpu.memory_space<vmem>>, %arg3: memref<2x1024xf32, #tpu.memory_space<vmem>>) attributes {dimension_semantics = [#tpu.dimension_semantics<parallel>, #tpu.dimension_semantics<parallel>], iteration_bounds = array<i64: 1, 1>, scalar_prefetch = 0 : i64, scratch_operands = 0 : i64, tpu.core_type = #tpu.core_type<tc>, window_params = [{transform_indices = @transform_0, window_bounds = array<i64: 2, 1024>}, {transform_indices = @transform_1, window_bounds = array<i64: 2, 1024>}]} {
    %c0 = arith.constant 0 : index
    %c0_0 = arith.constant 0 : index
    %0 = vector.load %arg2[%c0, %c0_0] : memref<2x1024xf32, #tpu.memory_space<vmem>>, vector<2x1024xf32>
    %c0_1 = arith.constant 0 : index
    %c0_2 = arith.constant 0 : index
    %1 = vector.load %arg3[%c0_1, %c0_2] : memref<2x1024xf32, #tpu.memory_space<vmem>>, vector<2x1024xf32>
    tpu.vector_store %arg3[%c0_1, %c0_2], %0 {strides = array<i32>} : memref<2x1024xf32, #tpu.memory_space<vmem>>, vector<2x1024xf32>,
    return
  }
  func.func @transform_0(%arg0: i32, %arg1: i32) -> (i32, i32) {
    %c0_i32 = arith.constant 0 : i32
    return %arg0, %arg1 : i32, i32
  }
  func.func @transform_1(%arg0: i32, %arg1: i32) -> (i32, i32) {
    %c0_i32 = arith.constant 0 : i32
    return %arg0, %arg1 : i32, i32
  }
}

</mosaic_0001>

<bundles_post_ra>
// kernel: tpu_custom_call.1
= control target key start
LH: loop header
LB: loop body
LE: loop exit
PB: predicated region body
PF: predicated region fallthrough
CT: control target
= control target key end

     0   :  { %s16_s0 = inlined_call_operand.hbm [shape: f32[2,1024], index: 0, kind: input, shape index: {}, may-alias: {0,1}]   ;;  %s17_s1 = inlined_call_operand.hbm [shape: f32[2,1024], index: 1, kind: output, shape index: {}, may-alias: {0,1}]  }

// kernel: tpu_custom_call.1
= control target key start
LH: loop header
LB: loop body
LE: loop exit
PB: predicated region body
PF: predicated region fallthrough
CT: control target
= control target key end

     0   :  { %6 = vsyncpa [#allocation3], 0  ;;  %s116_s0 = inlined_call_operand.hbm [shape: f32[2,1024], index: 0, kind: input, shape index: {}]   ;;  %s117_s1 = inlined_call_operand.hbm [shape: f32[2,1024], index: 1, kind: output, shape index: {}]  }
   0x1   :  { %7 = vsyncpa [#allocation4], 0  ;;  %s13_s8 = sshll.u32 %s116_s0, 4  ;;  %s98_s9 = smov [#allocation2]   ;;  %s14_s8 = int_to_ptr.hbm [resolvable:$true] %s13_s8 }
   0x2   :  { %s15_s10 = sshll.u32 %s98_s9, 4  ;;  %s16_s10 = int_to_ptr.vmem [resolvable:$true] %s15_s10 }
   0x3   :  { %18 = dma.hbm_to_vmem [thread:$0]  %s14_s8, 256, %s16_s10, [#allocation3]  }
   0x4   :  { %94 = dma.done.wait [#allocation3], 256  }
   0x5   :  { %95 = vsyncadd [#allocation3], 4294967040  ;;  %s99_s11 = smov [#allocation5]   ;;  %s34_s15 = sshll.u32 %s117_s1, 4  ;;  %v23_v0 = vld [vmem:[#allocation2] sm:$0xff]  ;;  %v24_v1 = vld [vmem:[#allocation2 + $0x8] sm:$0xff]  ;;  %s35_s15 = int_to_ptr.hbm [resolvable:$true] %s34_s15 }
   0x6   :  { %s32_s12 = sshll.u32 %s99_s11, 4  ;;  %25 = vst [vmem:[#allocation5] sm:$0xff] %v23_v0  ;;  %s33_s12 = int_to_ptr.vmem [resolvable:$true] %s32_s12 }
   0x7   :  { %26 = vst [vmem:[#allocation5 + $0x8] sm:$0xff] %v24_v1 }
   0x8   :  { %37 = dma.vmem_to_hbm [thread:$0]  %s33_s12, 256, %s35_s15, [#allocation4]  }
   0x9   :  { %96 = dma.done.wait [#allocation4], 256  }
   0xa   :  { %97 = vsyncadd [#allocation4], 4294967040 }
   0xb   :  { %42 = vsyncpa [#allocation3], 1 }
   0xc   :  { %43 = vsyncpa [#allocation4], 1 }

</bundles_post_ra>
